<compile_context>
chip_gen: v6e
topology: v6e:2x2x1
jax: 0.10.0
libtpu: 0.0.40
codegen_flags: <defaults>
</compile_context>

<pallas_src>
import math
import functools

import jax
import jax.numpy as jnp
from jax.experimental import pallas as pl
from jax.experimental.pallas import tpu as pltpu


def _round_up(v: int, m: int) -> int:
    return ((v + m - 1) // m) * m


def _pick_tile(dim_padded: int, base: int, cap: int) -> int:
    """Largest multiple of `base` that divides `dim_padded` and is <= cap."""
    cap = max(base, min(cap, dim_padded))
    start = cap - (cap % base)
    for t in range(start, base - 1, -base):
        if dim_padded % t == 0:
            return t
    return base


def _vmem_capacity_bytes() -> int:
    """Physical VMEM per core; conservative 64 MiB fallback (v7x-safe)."""
    try:
        info = pltpu.get_tpu_info()
        cap = getattr(info, "vmem_capacity_bytes", None)
        if cap:
            return int(cap)
    except Exception:
        pass
    return 64 * 1024 * 1024


def _linear_kernel_f32(x_ref, w_ref, b_ref, o_ref):
    """f32 output: accumulate directly into the resident output tile."""
    k = pl.program_id(2)

    @pl.when(k == 0)
    def _init():
        o_ref[...] = jnp.zeros_like(o_ref)

    o_ref[...] += jnp.dot(
        x_ref[...], w_ref[...], preferred_element_type=jnp.float32
    )

    @pl.when(k == pl.num_programs(2) - 1)
    def _finalize():
        o_ref[...] += b_ref[...]  # bias (f32) added exactly once


def _linear_kernel_acc(x_ref, w_ref, b_ref, o_ref, acc_ref):
    """Narrow output dtype: f32 VMEM scratch accumulator, cast at finalize."""
    k = pl.program_id(2)

    @pl.when(k == 0)
    def _init():
        acc_ref[...] = jnp.zeros_like(acc_ref)

    acc_ref[...] += jnp.dot(
        x_ref[...], w_ref[...], preferred_element_type=jnp.float32
    )

    @pl.when(k == pl.num_programs(2) - 1)
    def _finalize():
        o_ref[...] = (acc_ref[...] + b_ref[...]).astype(o_ref.dtype)


@functools.partial(
    jax.jit, static_argnames=("tm_max", "tn_max", "tk_max", "compute_dtype")
)
def mat_mul(x, weight, bias, *, tm_max=512, tn_max=512, tk_max=1024,
            compute_dtype=None):
    """y = x @ weight + bias via a tiled Pallas TPU matmul.

    x:      (..., in_features)
    weight: (in_features, out_features)
    bias:   (out_features,)
    compute_dtype: optional dtype (e.g. jnp.bfloat16) for the MXU inputs;
                   accumulation is always f32, output dtype follows x.
    """
    *lead, K = x.shape
    Kw, N = weight.shape
    assert K == Kw, "in_features mismatch"

    out_dtype = x.dtype
    cdt = jnp.dtype(compute_dtype) if compute_dtype is not None else jnp.dtype(x.dtype)

    x2 = x.reshape(-1, K)
    M = x2.shape[0]

    # Dtype handling: MXU inputs in compute dtype, bias kept f32 (tiny, exact).
    if x2.dtype != cdt:
        x2 = x2.astype(cdt)
    if weight.dtype != cdt:
        weight = weight.astype(cdt)
    if bias.dtype != jnp.float32:
        bias = bias.astype(jnp.float32)
    bias2 = bias.reshape(1, N)

    # Pad only to (8, 128) multiples, then pick tiles that divide padded dims.
    Mp, Np, Kp = _round_up(M, 8), _round_up(N, 128), _round_up(K, 128)
    tm = _pick_tile(Mp, 8, tm_max)
    tn = _pick_tile(Np, 128, tn_max)
    tk = _pick_tile(Kp, 128, tk_max)

    if (Mp, Kp) != (M, K):
        x2 = jnp.pad(x2, ((0, Mp - M), (0, Kp - K)))
    if (Kp, Np) != (K, N):
        weight = jnp.pad(weight, ((0, Kp - K), (0, Np - N)))
    if Np != N:
        bias2 = jnp.pad(bias2, ((0, 0), (0, Np - N)))

    grid = (Mp // tm, Np // tn, Kp // tk)

    out_is_f32 = jnp.dtype(out_dtype) == jnp.float32
    in_itemsize = jnp.dtype(cdt).itemsize
    out_itemsize = jnp.dtype(out_dtype).itemsize

    # VMEM budget: double-buffered X/W/bias/out (+ f32 scratch if used).
    block_bytes = (
        2 * (tm * tk + tk * tn) * in_itemsize
        + 2 * tn * 4
        + 2 * tm * tn * out_itemsize
        + (0 if out_is_f32 else tm * tn * 4)
    )
    vmem_ceiling = int(_vmem_capacity_bytes() * 0.75)  # ~48 MiB v7x, ~96 MiB v5e/v6e
    vmem_limit = int(min(max(4 * block_bytes, 32 * 1024 * 1024), vmem_ceiling))

    cost = pl.CostEstimate(
        flops=2 * Mp * Np * Kp,
        transcendentals=0,
        bytes_accessed=(
            Mp * Kp * in_itemsize * (Np // tn)   # X streamed once per N tile
            + Kp * Np * in_itemsize * (Mp // tm) # W streamed once per M tile
            + Mp * Np * out_itemsize
        ),
    )

    if out_is_f32:
        kernel = _linear_kernel_f32
        scratch_shapes = []
    else:
        kernel = _linear_kernel_acc
        scratch_shapes = [pltpu.VMEM((tm, tn), jnp.float32)]

    out_p = pl.pallas_call(
        kernel,
        out_shape=jax.ShapeDtypeStruct((Mp, Np), out_dtype),
        grid=grid,
        in_specs=[
            pl.BlockSpec((tm, tk), lambda i, j, k: (i, k)),   # X
            pl.BlockSpec((tk, tn), lambda i, j, k: (k, j)),   # W
            pl.BlockSpec((1, tn), lambda i, j, k: (0, j)),    # bias (f32, per-j)
        ],
        out_specs=pl.BlockSpec((tm, tn), lambda i, j, k: (i, j)),
        scratch_shapes=scratch_shapes,
        compiler_params=pltpu.CompilerParams(
            dimension_semantics=("parallel", "parallel", "arbitrary"),
            vmem_limit_bytes=vmem_limit,
        ),
        cost_estimate=cost,
    )(x2, weight, bias2)

    out = out_p[:M, :N]
    return out.reshape(*lead, N)


def init_params(key, in_features, out_features, dtype=jnp.float32):
    """Deterministic init mirroring the module's uniform(-1/sqrt(k), 1/sqrt(k))."""
    k_w, k_b = jax.random.split(key)
    bound = 1.0 / math.sqrt(in_features)
    weight = jax.random.uniform(
        k_w, (in_features, out_features), dtype=dtype, minval=-bound, maxval=bound
    )
    bias = jax.random.uniform(
        k_b, (out_features,), dtype=dtype, minval=-bound, maxval=bound
    )
    return weight, bias


if __name__ == "__main__":
    key = jax.random.PRNGKey(0)
    k_x, k_p = jax.random.split(key)

    # Small case consistent with the module: (batch=2, seq=8, in=32) -> out=64.
    in_features, out_features = 32, 64
    x = jax.random.normal(k_x, (2, 8, in_features), dtype=jnp.float32)
    weight, bias = init_params(k_p, in_features, out_features)

    y = jax.block_until_ready(mat_mul(x, weight, bias))
    y_ref = x @ weight + bias
    assert y.shape == (2, 8, out_features)
    assert jnp.allclose(y, y_ref, atol=1e-5, rtol=1e-5)

    # Awkward-N case (N=320 -> tn=384 divisor, no tile-multiple padding blowup).
    xb = jax.random.normal(jax.random.PRNGKey(1), (512, 384), dtype=jnp.float32)
    wb, bb = init_params(jax.random.PRNGKey(2), 384, 320)
    yb = jax.block_until_ready(mat_mul(xb, wb, bb))
    assert jnp.allclose(yb, xb @ wb + bb, atol=1e-4, rtol=1e-4)

    # Multi-K-step case exercising the accumulator across the reduction grid axis.
    xc = jax.random.normal(jax.random.PRNGKey(3), (256, 1536), dtype=jnp.float32)
    wc, bc = init_params(jax.random.PRNGKey(4), 1536, 256)
    yc = jax.block_until_ready(mat_mul(xc, wc, bc))
    assert jnp.allclose(yc, xc @ wc + bc, atol=1e-3, rtol=1e-3)

    # bf16 input path (scratch-accumulator kernel, f32 accumulation + f32 bias).
    xd = jax.random.normal(jax.random.PRNGKey(5), (128, 256), dtype=jnp.bfloat16)
    wd, bd = init_params(jax.random.PRNGKey(6), 256, 128)
    yd = jax.block_until_ready(mat_mul(xd, wd, bd))
    yd_ref = (
        xd.astype(jnp.float32) @ wd.astype(jnp.bfloat16).astype(jnp.float32) + bd
    ).astype(jnp.bfloat16)
    assert jnp.allclose(
        yd.astype(jnp.float32), yd_ref.astype(jnp.float32), atol=2e-2, rtol=2e-2
    )

    print("KERNEL_OK")
</pallas_src>

<mosaic_0001>
module attributes {stable_mosaic.version = 11 : i64} {
  func.func @_linear_kernel_f32(%arg0: i32, %arg1: i32, %arg2: i32, %arg3: memref<16x128xf32, #tpu.memory_space<vmem>>, %arg4: memref<128x128xf32, #tpu.memory_space<vmem>>, %arg5: memref<1x128xf32, #tpu.memory_space<vmem>>, %arg6: memref<16x128xf32, #tpu.memory_space<vmem>>) attributes {dimension_semantics = [#tpu.dimension_semantics<parallel>, #tpu.dimension_semantics<parallel>, #tpu.dimension_semantics<arbitrary>], iteration_bounds = array<i64: 1, 1, 1>, scalar_prefetch = 0 : i64, scratch_operands = 0 : i64, tpu.core_type = #tpu.core_type<tc>, window_params = [{transform_indices = @transform_0, window_bounds = array<i64: 16, 128>}, {transform_indices = @transform_1, window_bounds = array<i64: 128, 128>}, {transform_indices = @transform_2, window_bounds = array<i64: 1, 128>}, {transform_indices = @transform_3, window_bounds = array<i64: 16, 128>}]} {
    %c0_i32 = arith.constant 0 : i32
    %0 = arith.cmpi eq, %arg2, %c0_i32 : i32
    %1 = arith.extui %0 : i1 to i32
    %c0_i32_0 = arith.constant 0 : i32
    %2 = arith.cmpi ne, %1, %c0_i32_0 : i32
    scf.if %2 {
      %cst_10 = arith.constant 0.000000e+00 : f32
      %12 = vector.broadcast %cst_10 : f32 to vector<16x128xf32>
      %c0_11 = arith.constant 0 : index
      %c0_12 = arith.constant 0 : index
      %13 = vector.load %arg6[%c0_11, %c0_12] : memref<16x128xf32, #tpu.memory_space<vmem>>, vector<16x128xf32>
      tpu.vector_store %arg6[%c0_11, %c0_12], %12 {strides = array<i32>} : memref<16x128xf32, #tpu.memory_space<vmem>>, vector<16x128xf32>,
    } else {
    }
    %c0 = arith.constant 0 : index
    %c0_1 = arith.constant 0 : index
    %3 = vector.load %arg6[%c0, %c0_1] : memref<16x128xf32, #tpu.memory_space<vmem>>, vector<16x128xf32>
    %c0_2 = arith.constant 0 : index
    %c0_3 = arith.constant 0 : index
    %4 = vector.load %arg3[%c0_2, %c0_3] : memref<16x128xf32, #tpu.memory_space<vmem>>, vector<16x128xf32>
    %c0_4 = arith.constant 0 : index
    %c0_5 = arith.constant 0 : index
    %5 = vector.load %arg4[%c0_4, %c0_5] : memref<128x128xf32, #tpu.memory_space<vmem>>, vector<128x128xf32>
    %cst = arith.constant dense<0.000000e+00> : vector<16x128xf32>
    %6 = tpu.matmul %4, %5, %cst {dimension_numbers = #tpu.dot_dimension_numbers<[1], [0], [0], [1], [0, 0, 1, 1], [], []>} : vector<16x128xf32>, vector<128x128xf32>, vector<16x128xf32> -> vector<16x128xf32>
    %7 = arith.addf %3, %6 : vector<16x128xf32>
    %c0_6 = arith.constant 0 : index
    %c0_7 = arith.constant 0 : index
    %8 = vector.load %arg6[%c0_6, %c0_7] : memref<16x128xf32, #tpu.memory_space<vmem>>, vector<16x128xf32>
    tpu.vector_store %arg6[%c0_6, %c0_7], %7 {strides = array<i32>} : memref<16x128xf32, #tpu.memory_space<vmem>>, vector<16x128xf32>,
    %c0_i32_8 = arith.constant 0 : i32
    %9 = arith.cmpi eq, %arg2, %c0_i32_8 : i32
    %10 = arith.extui %9 : i1 to i32
    %c0_i32_9 = arith.constant 0 : i32
    %11 = arith.cmpi ne, %10, %c0_i32_9 : i32
    scf.if %11 {
      %c0_10 = arith.constant 0 : index
      %c0_11 = arith.constant 0 : index
      %12 = vector.load %arg6[%c0_10, %c0_11] : memref<16x128xf32, #tpu.memory_space<vmem>>, vector<16x128xf32>
      %c0_12 = arith.constant 0 : index
      %c0_13 = arith.constant 0 : index
      %13 = vector.load %arg5[%c0_12, %c0_13] : memref<1x128xf32, #tpu.memory_space<vmem>>, vector<1x128xf32>
      %14 = vector.broadcast %13 : vector<1x128xf32> to vector<16x128xf32>
      %15 = arith.addf %12, %14 : vector<16x128xf32>
      %c0_14 = arith.constant 0 : index
      %c0_15 = arith.constant 0 : index
      %16 = vector.load %arg6[%c0_14, %c0_15] : memref<16x128xf32, #tpu.memory_space<vmem>>, vector<16x128xf32>
      tpu.vector_store %arg6[%c0_14, %c0_15], %15 {strides = array<i32>} : memref<16x128xf32, #tpu.memory_space<vmem>>, vector<16x128xf32>,
    } else {
    }
    return
  }
  func.func @transform_0(%arg0: i32, %arg1: i32, %arg2: i32) -> (i32, i32) {
    %c0_i32 = arith.constant 0 : i32
    return %arg0, %arg2 : i32, i32
  }
  func.func @transform_1(%arg0: i32, %arg1: i32, %arg2: i32) -> (i32, i32) {
    %c0_i32 = arith.constant 0 : i32
    return %arg2, %arg1 : i32, i32
  }
  func.func @transform_2(%arg0: i32, %arg1: i32, %arg2: i32) -> (i32, i32) {
    %c0_i32 = arith.constant 0 : i32
    %c0_i32_0 = arith.constant 0 : i32
    return %c0_i32, %arg1 : i32, i32
  }
  func.func @transform_3(%arg0: i32, %arg1: i32, %arg2: i32) -> (i32, i32) {
    %c0_i32 = arith.constant 0 : i32
    return %arg0, %arg1 : i32, i32
  }
}

</mosaic_0001>

<bundles_post_ra>
// kernel: mat_mul.1
= control target key start
LH: loop header
LB: loop body
LE: loop exit
PB: predicated region body
PF: predicated region fallthrough
CT: control target
= control target key end

     0   :  { %s277_s1 = inlined_call_operand.vmem [shape: f32[128,128], index: 1, kind: input, shape index: {}]   ;;  %s278_s0 = inlined_call_operand.vmem [shape: f32[16,128], index: 0, kind: input, shape index: {}]   ;;  %s279_s2 = inlined_call_operand.vmem [shape: f32[1,128], index: 2, kind: input, shape index: {}]   ;;  %s280_s3 = inlined_call_operand.vmem [shape: f32[16,128], index: 3, kind: output, shape index: {}]  }
   0x1   :  { %v39_v0 = vld [vmem:[%s277_s1 + $0x78] sm:$0xff]  ;;  %v38_v1 = vld [vmem:[%s277_s1 + $0x70] sm:$0xff]  ;;  %v37_v2 = vld [vmem:[%s277_s1 + $0x68] sm:$0xff] }
   0x2   :  { %158 = vmatprep.subr.mxu0 %v39_v0  ;;  %v36_v3 = vld [vmem:[%s277_s1 + $0x60] sm:$0xff]  ;;  %v35_v5 = vld [vmem:[%s277_s1 + $0x58] sm:$0xff]  ;;  %v34_v6 = vld [vmem:[%s277_s1 + $0x50] sm:$0xff] }
   0x3   :  { %159 = vmatpush3.msra.mxu0 %v39_v0  ;;  %v22_v4 = vld [vmem:[%s278_s0] sm:$0xff]  ;;  %v33_v7 = vld [vmem:[%s277_s1 + $0x48] sm:$0xff]  ;;  %v31_v9 = vld [vmem:[%s277_s1 + $0x38] sm:$0xff] }
   0x4   :  { %160 = vmatprep.subr.mxu0 %v38_v1  ;;  %190 = vmatprep.mubr.f32.mxu0 %v22_v4  ;;  %v32_v8 = vld [vmem:[%s277_s1 + $0x40] sm:$0xff]  ;;  %v30_v10 = vld [vmem:[%s277_s1 + $0x30] sm:$0xff]  ;;  %v29_v11 = vld [vmem:[%s277_s1 + $0x28] sm:$0xff] }
   0x5   :  { %161 = vmatpush3.msra.mxu0 %v38_v1  ;;  %v28_v12 = vld [vmem:[%s277_s1 + $0x20] sm:$0xff]  ;;  %v27_v13 = vld [vmem:[%s277_s1 + $0x18] sm:$0xff]  ;;  %v26_v14 = vld [vmem:[%s277_s1 + $0x10] sm:$0xff] }
   0x6   :  { %162 = vmatprep.subr.mxu0 %v37_v2  ;;  %v25_v15 = vld [vmem:[%s277_s1 + $0x8] sm:$0xff]  ;;  %v24_v16 = vld [vmem:[%s277_s1] sm:$0xff] }
   0x7   :  { %163 = vmatpush3.msra.mxu0 %v37_v2  ;;  %v23_v17 = vld [vmem:[%s278_s0 + $0x8] sm:$0xff]  ;;  %v139_v19 = vld [vmem:[%s279_s2] ss:$0 sm:$0xff] }
   0x8   :  { %164 = vmatprep.subr.mxu0 %v36_v3 }
   0x9   :  { %165 = vmatpush3.msra.mxu0 %v36_v3 }
   0xa   :  { %166 = vmatprep.subr.mxu0 %v35_v5 }
   0xb   :  { %167 = vmatpush3.msra.mxu0 %v35_v5 }
   0xc   :  { %168 = vmatprep.subr.mxu0 %v34_v6 }
   0xd   :  { %169 = vmatpush3.msra.mxu0 %v34_v6 }
   0xe   :  { %170 = vmatprep.subr.mxu0 %v33_v7 }
   0xf   :  { %171 = vmatpush3.msra.mxu0 %v33_v7 }
  0x10   :  { %172 = vmatprep.subr.mxu0 %v32_v8 }
  0x11   :  { %173 = vmatpush3.msra.mxu0 %v32_v8 }
  0x12   :  { %174 = vmatprep.subr.mxu0 %v31_v9 }
  0x13   :  { %175 = vmatpush3.msra.mxu0 %v31_v9 }
  0x14   :  { %176 = vmatprep.subr.mxu0 %v30_v10 }
  0x15   :  { %177 = vmatpush3.msra.mxu0 %v30_v10 }
  0x16   :  { %178 = vmatprep.subr.mxu0 %v29_v11 }
  0x17   :  { %179 = vmatpush3.msra.mxu0 %v29_v11 }
  0x18   :  { %180 = vmatprep.subr.mxu0 %v28_v12 }
  0x19   :  { %181 = vmatpush3.msra.mxu0 %v28_v12 }
  0x1a   :  { %182 = vmatprep.subr.mxu0 %v27_v13 }
  0x1b   :  { %183 = vmatpush3.msra.mxu0 %v27_v13 }
  0x1c   :  { %184 = vmatprep.subr.mxu0 %v26_v14 }
  0x1d   :  { %185 = vmatpush3.msra.mxu0 %v26_v14 }
  0x1e   :  { %186 = vmatprep.subr.mxu0 %v25_v15 }
  0x1f   :  { %187 = vmatpush3.msra.mxu0 %v25_v15 }
  0x20   :  { %188 = vmatprep.subr.mxu0 %v24_v16 }
  0x21   :  { %189 = vmatpush3.msra.mxu0 %v24_v16 }
  0x22   :  { %191 = vmatmul.mubr.f32.vlgmr.msra.gmra.mxu0 %v23_v17 }
  0xe2   :  { %v192_v18 = vpop.f32.mrf.mxu0 }
  0xe3   :  { %v132_v21 = vadd.f32 %v192_v18, %v139_v19 }
  0xe4   :  { %v106_v20 = vpop.f32.mrf.mxu0 }
  0xe5   :  { %134 = vst [vmem:[%s280_s3 + $0x8] sm:$0xff] %v132_v21  ;;  %v131_v22 = vadd.f32 %v139_v19, %v106_v20 }
  0xe7   :  { %133 = vst [vmem:[%s280_s3] sm:$0xff] %v131_v22 }

</bundles_post_ra>
